<compile_context>
chip_gen: v7x
topology: tpu7x:2x2x1
jax: 0.10.0
libtpu: 0.0.40
codegen_flags: <defaults>
</compile_context>

<pallas_src>
import functools

import jax
import jax.numpy as jnp
from jax.experimental import pallas as pl
from jax.experimental.pallas import tpu as pltpu

LANES = 128
# 4096 rows x 128 lanes x 4 B = 2 MiB per f32 input block.
MAX_TILE_ROWS = 4096


def _round_up(x: int, m: int) -> int:
    return ((x + m - 1) // m) * m


def _mse_partial_kernel(y_ref, gt_ref, psum_ref, *, chunk, tile_rows,
                        tiles_per_group, total_rows, ragged, unroll):
    """Accumulate sum((y - gt)^2) of this (tile_rows, 128) tile into an
    (8, 128) f32 partial sum living in the revisited output block."""
    t = pl.program_id(1)  # sequential reduction axis within this group

    @pl.when(t == 0)
    def _():
        psum_ref[...] = jnp.zeros_like(psum_ref)

    n_chunks = tile_rows // chunk

    if ragged:
        # Mask rows whose logical index falls past the real array end
        # (partial last tile, or a fully-out-of-range virtual tile whose DMA
        # was clamped by the index_map). A compare+select per chunk is fully
        # hidden under DMA in this mem-bound kernel.
        g = pl.program_id(0)
        tile_start = (g * tiles_per_group + t) * tile_rows
        row_iota = jax.lax.broadcasted_iota(jnp.int32, (chunk, LANES), 0)

    def body(i, partial):
        r0 = pl.multiple_of(i * chunk, chunk)
        yv = y_ref[pl.ds(r0, chunk), :].astype(jnp.float32)
        gv = gt_ref[pl.ds(r0, chunk), :].astype(jnp.float32)
        d = yv - gv
        sq = d * d
        if ragged:
            rid = tile_start + r0 + row_iota
            sq = jnp.where(rid < total_rows, sq, 0.0)
        return partial + sq

    partial = jax.lax.fori_loop(
        0, n_chunks, body, jnp.zeros((chunk, LANES), jnp.float32),
        unroll=unroll)

    # Fold the native-chunk accumulator down to the (8, 128) output layout.
    folded = partial[0:8, :]
    for k in range(1, chunk // 8):
        folded = folded + partial[k * 8:(k + 1) * 8, :]
    psum_ref[0] += folded


def mse_loss(y, gt):
    """MSE loss (mean reduction), matching torch.nn.MSELoss()(y, gt)."""
    assert y.shape == gt.shape, "y and gt must have the same shape"
    n = y.size
    y_isz = jnp.dtype(y.dtype).itemsize
    g_isz = jnp.dtype(gt.dtype).itemsize
    # Native sublane packing (8 rows for 4-byte, 16 for 2-byte, 32 for 1-byte
    # elements) -> whole-vreg loads in the hot loop.
    sub = max(8, 32 // min(y_isz, g_isz))

    yf = y.reshape(-1)
    gf = gt.reshape(-1)

    rows = pl.cdiv(n, LANES)
    rows_p = _round_up(rows, sub)
    padded = rows_p * LANES
    if padded != n:
        # Rare path: n not a multiple of 128*sub. Minimal zero-pad so the
        # lane-dense (rows, 128) reshape exists; zeros contribute 0 to the
        # sum and we divide by the true n. The test shape takes no pad.
        # TODO(synk): replace with in-kernel element-level masking to avoid
        # this extra HBM copy on unaligned shapes.
        yf = jnp.pad(yf, (0, padded - n))
        gf = jnp.pad(gf, (0, padded - n))
    y2 = yf.reshape(rows_p, LANES)
    g2 = gf.reshape(rows_p, LANES)

    tile_rows = min(rows_p, MAX_TILE_ROWS)      # multiple of sub (and of 8)
    num_tiles = pl.cdiv(rows_p, tile_rows)

    # 2-way group split whenever there is more than one tile: the outer
    # "parallel" axis can then shard across TensorCores on megacore parts.
    n_groups = 2 if num_tiles >= 2 else 1
    tiles_per_group = pl.cdiv(num_tiles, n_groups)
    covered_rows = n_groups * tiles_per_group * tile_rows
    ragged = covered_rows > rows_p              # some tile rows past the end

    need_clamp = n_groups * tiles_per_group > num_tiles
    if need_clamp:
        def in_map(g, t):
            return (jnp.minimum(g * tiles_per_group + t, num_tiles - 1), 0)
    else:
        def in_map(g, t):
            return (g * tiles_per_group + t, 0)

    n_chunks = tile_rows // sub
    kernel = functools.partial(
        _mse_partial_kernel, chunk=sub, tile_rows=tile_rows,
        tiles_per_group=tiles_per_group, total_rows=rows_p, ragged=ragged,
        unroll=min(8, n_chunks))

    out_bytes = n_groups * 8 * LANES * 4
    partials = pl.pallas_call(
        kernel,
        out_shape=jax.ShapeDtypeStruct((n_groups, 8, LANES), jnp.float32),
        grid=(n_groups, tiles_per_group),
        in_specs=[
            pl.BlockSpec((tile_rows, LANES), in_map),
            pl.BlockSpec((tile_rows, LANES), in_map),
        ],
        out_specs=pl.BlockSpec((1, 8, LANES), lambda g, t: (g, 0, 0)),
        compiler_params=pltpu.CompilerParams(
            dimension_semantics=("parallel", "arbitrary")),
        cost_estimate=pl.CostEstimate(
            flops=3 * n,
            transcendentals=0,
            bytes_accessed=n * (y_isz + g_isz) + out_bytes),
    )(y2, g2)

    # One tiny cross-lane reduce + divide by the TRUE element count.
    return jnp.sum(partials) / jnp.float32(n)


if __name__ == "__main__":
    key = jax.random.PRNGKey(0)
    ky, kg = jax.random.split(key)
    # Shapes consistent with a compressor output / ground-truth pair (NCHW).
    y = jax.random.normal(ky, (2, 4, 16, 16), dtype=jnp.float32)
    gt = jax.random.normal(kg, (2, 4, 16, 16), dtype=jnp.float32)

    loss = mse_loss(y, gt)
    jax.block_until_ready(loss)

    ref = jnp.mean((y - gt) ** 2)
    assert jnp.allclose(loss, ref, rtol=1e-5, atol=1e-6), (loss, ref)
    print("KERNEL_OK")
</pallas_src>

<mosaic_0001>
module attributes {stable_mosaic.version = 11 : i64} {
  func.func @_mse_partial_kernel(%arg0: i32, %arg1: i32, %arg2: memref<16x128xf32, #tpu.memory_space<vmem>>, %arg3: memref<16x128xf32, #tpu.memory_space<vmem>>, %arg4: memref<1x8x128xf32, #tpu.memory_space<vmem>>) attributes {dimension_semantics = [#tpu.dimension_semantics<parallel>, #tpu.dimension_semantics<arbitrary>], iteration_bounds = array<i64: 1, 1>, scalar_prefetch = 0 : i64, scratch_operands = 0 : i64, tpu.core_type = #tpu.core_type<tc>, window_params = [{transform_indices = @transform_0, window_bounds = array<i64: 16, 128>}, {transform_indices = @transform_1, window_bounds = array<i64: 16, 128>}, {transform_indices = @transform_2, window_bounds = array<i64: 1, 8, 128>}]} {
    %c0_i32 = arith.constant 0 : i32
    %0 = arith.cmpi eq, %arg1, %c0_i32 : i32
    %1 = arith.extui %0 : i1 to i32
    %c0_i32_0 = arith.constant 0 : i32
    %2 = arith.cmpi ne, %1, %c0_i32_0 : i32
    scf.if %2 {
      %cst_12 = arith.constant 0.000000e+00 : f32
      %28 = vector.broadcast %cst_12 : f32 to vector<1x8x128xf32>
      %c0_13 = arith.constant 0 : index
      %c0_14 = arith.constant 0 : index
      %c0_15 = arith.constant 0 : index
      %29 = vector.load %arg4[%c0_13, %c0_14, %c0_15] : memref<1x8x128xf32, #tpu.memory_space<vmem>>, vector<1x8x128xf32>
      tpu.vector_store %arg4[%c0_13, %c0_14, %c0_15], %28 {strides = array<i32>} : memref<1x8x128xf32, #tpu.memory_space<vmem>>, vector<1x8x128xf32>,
    } else {
    }
    %cst = arith.constant 0.000000e+00 : f32
    %3 = vector.broadcast %cst : f32 to vector<8x128xf32>
    %c0_i32_1 = arith.constant 0 : i32
    %c8_i32 = arith.constant 8 : i32
    %4 = arith.muli %c0_i32_1, %c8_i32 : i32
    %5 = tpu.assume_multiple %4, 8 : i32
    %6 = arith.index_cast %5 : i32 to index
    %c0 = arith.constant 0 : index
    %7 = vector.load %arg2[%6, %c0] : memref<16x128xf32, #tpu.memory_space<vmem>>, vector<8x128xf32>
    %8 = arith.index_cast %5 : i32 to index
    %c0_2 = arith.constant 0 : index
    %9 = vector.load %arg3[%8, %c0_2] : memref<16x128xf32, #tpu.memory_space<vmem>>, vector<8x128xf32>
    %10 = arith.subf %7, %9 : vector<8x128xf32>
    %11 = arith.mulf %10, %10 : vector<8x128xf32>
    %12 = arith.addf %3, %11 : vector<8x128xf32>
    %c1_i32 = arith.constant 1 : i32
    %c8_i32_3 = arith.constant 8 : i32
    %13 = arith.muli %c1_i32, %c8_i32_3 : i32
    %14 = tpu.assume_multiple %13, 8 : i32
    %15 = arith.index_cast %14 : i32 to index
    %c0_4 = arith.constant 0 : index
    %16 = vector.load %arg2[%15, %c0_4] : memref<16x128xf32, #tpu.memory_space<vmem>>, vector<8x128xf32>
    %17 = arith.index_cast %14 : i32 to index
    %c0_5 = arith.constant 0 : index
    %18 = vector.load %arg3[%17, %c0_5] : memref<16x128xf32, #tpu.memory_space<vmem>>, vector<8x128xf32>
    %19 = arith.subf %16, %18 : vector<8x128xf32>
    %20 = arith.mulf %19, %19 : vector<8x128xf32>
    %21 = arith.addf %12, %20 : vector<8x128xf32>
    %c2_i32 = arith.constant 2 : i32
    %c0_6 = arith.constant 0 : index
    %c0_7 = arith.constant 0 : index
    %c0_8 = arith.constant 0 : index
    %22 = vector.load %arg4[%c0_6, %c0_7, %c0_8] : memref<1x8x128xf32, #tpu.memory_space<vmem>>, vector<1x8x128xf32>
    %23 = vector.shape_cast %22 : vector<1x8x128xf32> to vector<8x128xf32>
    %24 = arith.addf %23, %21 : vector<8x128xf32>
    %c0_9 = arith.constant 0 : index
    %c0_10 = arith.constant 0 : index
    %c0_11 = arith.constant 0 : index
    %25 = vector.load %arg4[%c0_9, %c0_10, %c0_11] : memref<1x8x128xf32, #tpu.memory_space<vmem>>, vector<1x8x128xf32>
    %26 = vector.shape_cast %25 : vector<1x8x128xf32> to vector<8x128xf32>
    %27 = vector.shape_cast %24 : vector<8x128xf32> to vector<1x8x128xf32>
    tpu.vector_store %arg4[%c0_9, %c0_10, %c0_11], %27 {strides = array<i32>} : memref<1x8x128xf32, #tpu.memory_space<vmem>>, vector<1x8x128xf32>,
    return
  }
  func.func @transform_0(%arg0: i32, %arg1: i32) -> (i32, i32) {
    %c1_i32 = arith.constant 1 : i32
    %0 = arith.muli %arg0, %c1_i32 : i32
    %1 = arith.addi %0, %arg1 : i32
    %c0_i32 = arith.constant 0 : i32
    %c0_i32_0 = arith.constant 0 : i32
    return %1, %c0_i32 : i32, i32
  }
  func.func @transform_1(%arg0: i32, %arg1: i32) -> (i32, i32) {
    %c1_i32 = arith.constant 1 : i32
    %0 = arith.muli %arg0, %c1_i32 : i32
    %1 = arith.addi %0, %arg1 : i32
    %c0_i32 = arith.constant 0 : i32
    %c0_i32_0 = arith.constant 0 : i32
    return %1, %c0_i32 : i32, i32
  }
  func.func @transform_2(%arg0: i32, %arg1: i32) -> (i32, i32, i32) {
    %c0_i32 = arith.constant 0 : i32
    %c0_i32_0 = arith.constant 0 : i32
    %c0_i32_1 = arith.constant 0 : i32
    return %arg0, %c0_i32, %c0_i32_0 : i32, i32, i32
  }
}

</mosaic_0001>

<bundles_post_ra>
// kernel: tpu_custom_call.1
= control target key start
LH: loop header
LB: loop body
LE: loop exit
PB: predicated region body
PF: predicated region fallthrough
CT: control target
= control target key end

     0   :  { %7 = vsyncpa [#allocation3], 0  ;;  %s222_s0 = inlined_call_operand.hbm [shape: f32[16,128], index: 0, kind: input, shape index: {}]   ;;  %s223_s1 = inlined_call_operand.hbm [shape: f32[16,128], index: 1, kind: input, shape index: {}]   ;;  %s224_s2 = inlined_call_operand.hbm [shape: f32[1,8,128], index: 2, kind: output, shape index: {}]  }
   0x1   :  { %8 = vsyncpa [#allocation6], 0 }
   0x2   :  { %9 = vsyncpa [#allocation4], 0  ;;  %s166_s9 = smov [#allocation2]   ;;  %s94_s13 = scalar_lea.hbm %s222_s0, 256 }
   0x3   :  { %s19_s10 = sshll.u32 %s166_s9, 4  ;;  %p95_p0 = scmp.ne.s32.totalorder %s222_s0, %s94_s13  ;;  %s20_s10 = int_to_ptr.vmem [resolvable:$true] %s19_s10 }
   0x4   :  { %p98_p1 = scmp.lt.u32.totalorder %s94_s13, %s222_s0 }
   0x6   :  { %p100_p2 = pnand %p98_p1, %p95_p0 }
   0x8   :  { %103 = shalt.err (!%p100_p2)
}
   0x9   :  { %s104_s18 = scalar_lea.vmem %s20_s10, 256  ;;  %p109_p4 = scmp.lt.s32.totalorder %s20_s10, %s20_s10 }
   0xa   :  { %p105_p3 = scmp.ne.s32.totalorder %s20_s10, %s104_s18  ;;  %p110_p5 = scmp.lt.s32.totalorder %s104_s18, %s104_s18 }
   0xc   :  { %p111_p6 = por %p110_p5, %p109_p4 }
   0xe   :  { %p112_p7 = pnand %p111_p6, %p105_p3 }
  0x10   :  { %115 = shalt.err (!%p112_p7)
}
  0x11   :  { %s167_s19 = smov 128   ;;  %s168_s20 = smov 8  }
  0x12   :  { %25 = dma.hbm_to_vmem [thread:$0]  %s222_s0, 256, %s20_s10, [#allocation3], %s167_s19, %s167_s19, %s168_s20  }
  0x13   :  { %s169_s23 = smov [#allocation5]   ;;  %s116_s27 = scalar_lea.hbm %s223_s1, 256 }
  0x14   :  { %s35_s24 = sshll.u32 %s169_s23, 4  ;;  %p117_p8 = scmp.ne.s32.totalorder %s223_s1, %s116_s27  ;;  %s36_s24 = int_to_ptr.vmem [resolvable:$true] %s35_s24 }
  0x15   :  { %p120_p9 = scmp.lt.u32.totalorder %s116_s27, %s223_s1 }
  0x17   :  { %p122_p10 = pnand %p120_p9, %p117_p8 }
  0x19   :  { %125 = shalt.err (!%p122_p10)
}
  0x1a   :  { %s126_s4 = scalar_lea.vmem %s36_s24, 256  ;;  %p131_p12 = scmp.lt.s32.totalorder %s36_s24, %s36_s24 }
  0x1b   :  { %p127_p11 = scmp.ne.s32.totalorder %s36_s24, %s126_s4  ;;  %p132_p13 = scmp.lt.s32.totalorder %s126_s4, %s126_s4 }
  0x1d   :  { %p133_p0 = por %p132_p13, %p131_p12 }
  0x1f   :  { %p134_p1 = pnand %p133_p0, %p127_p11 }
  0x21   :  { %137 = shalt.err (!%p134_p1)
}
  0x22   :  { %41 = dma.hbm_to_vmem [thread:$0]  %s223_s1, 256, %s36_s24, [#allocation6], %s167_s19, %s167_s19, %s168_s20  }
  0x23   :  { %160 = dma.done.wait [#allocation3], 256  }
  0x24   :  { %161 = vsyncadd [#allocation3], 4294967040 }
  0x25   :  { %162 = dma.done.wait [#allocation6], 256  }
  0x26   :  { %163 = vsyncadd [#allocation6], 4294967040  ;;  %v57_v0 = vld [vmem:[#allocation2] sm:$0xff]  ;;  %v58_v1 = vld [vmem:[#allocation5] sm:$0xff]  ;;  %s170_s6 = smov [#allocation7]  }
  0x27   :  { %v63_v2 = vld [vmem:[#allocation2 + $0x8] sm:$0xff]  ;;  %v59_v3 = vsub.f32 %v57_v0, %v58_v1  ;;  %v65_v4 = vld [vmem:[#allocation5 + $0x8] sm:$0xff]  ;;  %s78_s7 = sshll.u32 %s170_s6, 4  ;;  %s79_s7 = int_to_ptr.vmem [resolvable:$true] %s78_s7 }
  0x28   :  { %v66_v5 = vsub.f32 %v63_v2, %v65_v4  ;;  %s138_s8 = scalar_lea.vmem %s79_s7, 128  ;;  %p143_p3 = scmp.lt.s32.totalorder %s79_s7, %s79_s7 }
  0x29   :  { %v60_v6 = vmul.f32 %v59_v3, %v59_v3  ;;  %p139_p2 = scmp.ne.s32.totalorder %s79_s7, %s138_s8  ;;  %p144_p4 = scmp.lt.s32.totalorder %s138_s8, %s138_s8 }
  0x2a   :  { %v67_v7 = vmul.f32 %v66_v5, %v66_v5 }
  0x2b   :  { %p145_p5 = por %p144_p4, %p143_p3 }
  0x2c   :  { %v68_v8 = vadd.f32 %v67_v7, %v60_v6 }
  0x2d   :  { %p146_p6 = pnand %p145_p5, %p139_p2 }
  0x2e   :  { %71 = vst [vmem:[#allocation7] sm:$0xff] %v68_v8 }
  0x2f   :  { %149 = shalt.err (!%p146_p6)
}
  0x30   :  { %s150_s10 = scalar_lea.hbm %s224_s2, 128 }
  0x31   :  { %p151_p7 = scmp.ne.s32.totalorder %s224_s2, %s150_s10  ;;  %p154_p8 = scmp.lt.u32.totalorder %s150_s10, %s224_s2 }
  0x33   :  { %p156_p9 = pnand %p154_p8, %p151_p7 }
  0x35   :  { %159 = shalt.err (!%p156_p9)
}
  0x36   :  { %81 = dma.vmem_to_hbm [thread:$0]  %s79_s7, 128, %s224_s2, [#allocation4]  }
  0x37   :  { %164 = dma.done.wait [#allocation4], 128  }
  0x38   :  { %165 = vsyncadd [#allocation4], 4294967168 }
  0x39   :  { %85 = vsyncpa [#allocation3], 1 }
  0x3a   :  { %86 = vsyncpa [#allocation6], 1 }
  0x3b   :  { %87 = vsyncpa [#allocation4], 1 }

</bundles_post_ra>
